<compile_context>
chip_gen: v7x
topology: tpu7x:2x2x1
jax: 0.10.0
libtpu: 0.0.40
codegen_flags: <defaults>
</compile_context>

<pallas_src>
import functools

import jax
import jax.numpy as jnp
from jax.experimental import pallas as pl
from jax.experimental.pallas import tpu as pltpu

KSIZE = 7           # kernel_size=7 branch of the module
PAD = 3             # padding = 3 when kernel_size == 7
_REDUCE_CHUNK = 2048    # lanes per accumulation strip (bounds vreg pressure)
_HW_TILE_MAX = 16384    # max spatial tile (multiple of 128)


# ---------------------------------------------------------------------------
# Kernel 1 (hot path): channel sum/max reduction on the lane-dense view.
# ---------------------------------------------------------------------------
def _reduce_kernel(x_ref, o_ref, *, C, C_TILE, HW_TILE, MASK):
    """grid = (batch, hw_tile, c_tile)  [channel reduction axis last].

    x_ref : VMEM (1, C_TILE, HW_TILE) input slab for this grid step.
    o_ref : VMEM (1, 2, HW_TILE) float32, resident across the c axis:
            row 0 = running channel sum (scaled to mean at the end),
            row 1 = running channel max.
    """
    ci = pl.program_id(2)

    @pl.when(ci == 0)
    def _():
        o_ref[0, 0, :] = jnp.zeros((HW_TILE,), jnp.float32)
        o_ref[0, 1, :] = jnp.full((HW_TILE,), -jnp.inf, jnp.float32)

    # Whole-block (vectorized) sum+max, accumulated into the output block in
    # bounded spatial strips so the partial reductions stay within the vreg
    # file even for large H*W.
    for s0 in range(0, HW_TILE, _REDUCE_CHUNK):
        cs = min(_REDUCE_CHUNK, HW_TILE - s0)
        blk = x_ref[0, :, s0:s0 + cs].astype(jnp.float32)      # (C_TILE, cs)
        if MASK:
            # Last channel tile is partial: DMA-padded rows must not reduce.
            nvalid = C - ci * C_TILE
            ch = jax.lax.broadcasted_iota(jnp.int32, blk.shape, 0)
            valid = ch < nvalid
            bs = jnp.where(valid, blk, 0.0)
            bm = jnp.where(valid, blk, -jnp.inf)
        else:
            bs = bm = blk
        o_ref[0, 0, s0:s0 + cs] += bs.sum(axis=0)
        o_ref[0, 1, s0:s0 + cs] = jnp.maximum(o_ref[0, 1, s0:s0 + cs],
                                              bm.max(axis=0))

    @pl.when(ci == pl.num_programs(2) - 1)
    def _():
        o_ref[0, 0, :] = o_ref[0, 0, :] * (1.0 / C)   # sum -> mean


# ---------------------------------------------------------------------------
# Kernel 2 (cold path): 7x7 conv (2 in -> 1 out, pad 3, no bias) + sigmoid.
# ---------------------------------------------------------------------------
def _conv_kernel(w_ref, f_ref, o_ref, pad_ref, *, H, W):
    """grid = (batch,).

    w_ref   : SMEM (2*7*7,) f32 weights (torch OIHW order, O=1 squeezed).
    f_ref   : VMEM (1, 2, H, W) f32 [mean, max] maps for this batch element.
    o_ref   : VMEM (1, 1, H, W) output block.
    pad_ref : VMEM (2, H+2*PAD, W+2*PAD) f32 zero-padded feature maps.
    """
    # Runs once per batch element on ~2*H*W floats; the simple
    # zero-then-store-interior padding is kept on this cold path.
    pad_ref[...] = jnp.zeros(pad_ref.shape, jnp.float32)
    pad_ref[0, PAD:PAD + H, PAD:PAD + W] = f_ref[0, 0]
    pad_ref[1, PAD:PAD + H, PAD:PAD + W] = f_ref[0, 1]

    # Single output channel => MXU would be <1% utilized; use a 98-tap VPU
    # shifted multiply-accumulate instead.
    acc = jnp.zeros((H, W), jnp.float32)
    for c in range(2):
        base = c * KSIZE * KSIZE
        for kh in range(KSIZE):
            for kw in range(KSIZE):
                wv = w_ref[base + kh * KSIZE + kw]
                acc = acc + wv * pad_ref[c, kh:kh + H, kw:kw + W]

    o_ref[0, 0, :, :] = jax.nn.sigmoid(acc).astype(o_ref.dtype)


# ---------------------------------------------------------------------------
# Tiling / VMEM planning.
# ---------------------------------------------------------------------------
def _vmem_capacity_bytes():
    try:
        return int(pltpu.get_tpu_info().vmem_capacity_bytes)
    except Exception:
        return 64 * 1024 * 1024      # v7x per-core figure; safe lower bound


def _plan_reduction(C, HW, itemsize):
    """Pick (c_tile, hw_tile, vmem_limit) from *padded* VMEM footprints."""
    pack = max(8, 32 // itemsize)                   # sublane packing for dtype
    if HW % 128 == 0:
        hw_tile = min(HW, _HW_TILE_MAX)
    else:
        hw_tile = HW                                # must equal the full dim
    hw_pad = pl.cdiv(hw_tile, 128) * 128

    cap = _vmem_capacity_bytes()
    # ~1/8 of VMEM per input block (x2 double-buffered => ~1/4), 1..16 MiB.
    target = min(16 << 20, max(1 << 20, cap // 8))
    bytes_per_ch = hw_pad * itemsize
    ct = max(1, target // bytes_per_ch)
    if ct >= C:
        c_tile = C                                  # full reduction in one tile
    else:
        c_tile = min(C, max(pack, (ct // pack) * pack))

    in_block = pl.cdiv(c_tile, pack) * pack * hw_pad * itemsize
    out_block = 8 * hw_pad * 4                      # (2, hw) padded to 8 sublanes
    est = 2 * in_block + 2 * out_block + (2 << 20)
    vmem_limit = int(min(cap, max(32 << 20, 2 * est)))
    return int(c_tile), int(hw_tile), vmem_limit


# ---------------------------------------------------------------------------
# Wrapper.
# ---------------------------------------------------------------------------
def spatial_attention(x, weight):
    """x: (B, C, H, W); weight: (1, 2, 7, 7) float32 -> (B, 1, H, W)."""
    B, C, H, W = x.shape
    assert weight.shape == (1, 2, KSIZE, KSIZE), weight.shape
    HW = H * W
    itemsize = jnp.dtype(x.dtype).itemsize

    c_tile, hw_tile, vmem_limit = _plan_reduction(C, HW, itemsize)
    n_hw = int(pl.cdiv(HW, hw_tile))
    n_c = int(pl.cdiv(C, c_tile))
    mask = (C % c_tile) != 0

    # ---- pass 1: lane-dense channel mean/max reduction -------------------
    x_flat = x.reshape(B, C, HW)                    # contiguous -> free
    reduce_fn = functools.partial(_reduce_kernel, C=C, C_TILE=c_tile,
                                  HW_TILE=hw_tile, MASK=mask)
    feat = pl.pallas_call(
        reduce_fn,
        out_shape=jax.ShapeDtypeStruct((B, 2, HW), jnp.float32),
        grid_spec=pltpu.PrefetchScalarGridSpec(
            num_scalar_prefetch=0,
            grid=(B, n_hw, n_c),
            in_specs=[
                pl.BlockSpec((1, c_tile, hw_tile), lambda b, h, c: (b, c, h)),
            ],
            # Accumulator pattern: output block invariant along the c axis.
            out_specs=pl.BlockSpec((1, 2, hw_tile), lambda b, h, c: (b, 0, h)),
        ),
        compiler_params=pltpu.CompilerParams(
            dimension_semantics=("parallel", "parallel", "arbitrary"),
            vmem_limit_bytes=vmem_limit,
        ),
    )(x_flat)

    # ---- pass 2: tiny per-batch 7x7 conv + sigmoid ------------------------
    feat2d = feat.reshape(B, 2, H, W)
    w_flat = weight.reshape(-1).astype(jnp.float32)   # row-major OIHW flatten
    conv_fn = functools.partial(_conv_kernel, H=H, W=W)
    out = pl.pallas_call(
        conv_fn,
        out_shape=jax.ShapeDtypeStruct((B, 1, H, W), x.dtype),
        grid_spec=pltpu.PrefetchScalarGridSpec(
            num_scalar_prefetch=0,
            grid=(B,),
            in_specs=[
                pl.BlockSpec(memory_space=pltpu.MemorySpace.SMEM),
                pl.BlockSpec((1, 2, H, W), lambda b: (b, 0, 0, 0)),
            ],
            out_specs=pl.BlockSpec((1, 1, H, W), lambda b: (b, 0, 0, 0)),
            scratch_shapes=[
                pltpu.VMEM((2, H + 2 * PAD, W + 2 * PAD), jnp.float32),
            ],
        ),
        compiler_params=pltpu.CompilerParams(
            dimension_semantics=("parallel",),
        ),
    )(w_flat, feat2d)
    return out


def reference(x, weight):
    """Pure-JAX reference mirroring the PyTorch forward."""
    avg = jnp.mean(x, axis=1, keepdims=True)
    mx = jnp.max(x, axis=1, keepdims=True)
    feat = jnp.concatenate([avg, mx], axis=1)
    y = jax.lax.conv_general_dilated(
        feat, weight, window_strides=(1, 1),
        padding=((PAD, PAD), (PAD, PAD)),
        dimension_numbers=("NCHW", "OIHW", "NCHW"))
    return jax.nn.sigmoid(y)


if __name__ == "__main__":
    key = jax.random.PRNGKey(0)
    kx, kw = jax.random.split(key)

    B, C, H, W = 2, 4, 16, 16
    x = jax.random.normal(kx, (B, C, H, W), dtype=jnp.float32)

    # Deterministic conv1 weight init (shape (out=1, in=2, 7, 7), bias=False),
    # kaiming-uniform-like bound as nn.Conv2d uses by default.
    fan_in = 2 * KSIZE * KSIZE
    bound = (1.0 / fan_in) ** 0.5
    weight = jax.random.uniform(kw, (1, 2, KSIZE, KSIZE), jnp.float32,
                                minval=-bound, maxval=bound)

    out = jax.block_until_ready(spatial_attention(x, weight))

    ref = reference(x, weight)
    assert out.shape == (B, 1, H, W), out.shape
    assert jnp.allclose(out, ref, atol=1e-5, rtol=1e-5), \
        float(jnp.max(jnp.abs(out - ref)))

    print("KERNEL_OK")
</pallas_src>

<mosaic_0001>
module attributes {stable_mosaic.version = 11 : i64} {
  func.func @_reduce_kernel(%arg0: i32, %arg1: i32, %arg2: i32, %arg3: memref<1x4x256xf32, #tpu.memory_space<vmem>>, %arg4: memref<1x2x256xf32, #tpu.memory_space<vmem>>) attributes {dimension_semantics = [#tpu.dimension_semantics<parallel>, #tpu.dimension_semantics<parallel>, #tpu.dimension_semantics<arbitrary>], iteration_bounds = array<i64: 2, 1, 1>, scalar_prefetch = 0 : i64, scratch_operands = 0 : i64, tpu.core_type = #tpu.core_type<tc>, window_params = [{transform_indices = @transform_0, window_bounds = array<i64: 1, 4, 256>}, {transform_indices = @transform_1, window_bounds = array<i64: 1, 2, 256>}]} {
    %c0_i32 = arith.constant 0 : i32
    %0 = arith.cmpi eq, %arg2, %c0_i32 : i32
    %1 = arith.extui %0 : i1 to i32
    %c0_i32_0 = arith.constant 0 : i32
    %2 = arith.cmpi ne, %1, %c0_i32_0 : i32
    scf.if %2 {
      %cst_17 = arith.constant 0.000000e+00 : f32
      %22 = vector.broadcast %cst_17 : f32 to vector<256xf32>
      %c0_18 = arith.constant 0 : index
      %c0_19 = arith.constant 0 : index
      %c0_20 = arith.constant 0 : index
      %23 = vector.load %arg4[%c0_18, %c0_19, %c0_20] : memref<1x2x256xf32, #tpu.memory_space<vmem>>, vector<1x1x256xf32>
      %24 = vector.shape_cast %23 : vector<1x1x256xf32> to vector<256xf32>
      %25 = vector.shape_cast %22 : vector<256xf32> to vector<1x1x256xf32>
      tpu.vector_store %arg4[%c0_18, %c0_19, %c0_20], %25 {strides = array<i32>} : memref<1x2x256xf32, #tpu.memory_space<vmem>>, vector<1x1x256xf32>,
      %cst_21 = arith.constant 0xFF800000 : f32
      %26 = vector.broadcast %cst_21 : f32 to vector<256xf32>
      %c0_22 = arith.constant 0 : index
      %c1_23 = arith.constant 1 : index
      %c0_24 = arith.constant 0 : index
      %27 = vector.load %arg4[%c0_22, %c1_23, %c0_24] : memref<1x2x256xf32, #tpu.memory_space<vmem>>, vector<1x1x256xf32>
      %28 = vector.shape_cast %27 : vector<1x1x256xf32> to vector<256xf32>
      %29 = vector.shape_cast %26 : vector<256xf32> to vector<1x1x256xf32>
      tpu.vector_store %arg4[%c0_22, %c1_23, %c0_24], %29 {strides = array<i32>} : memref<1x2x256xf32, #tpu.memory_space<vmem>>, vector<1x1x256xf32>,
    } else {
    }
    %c0 = arith.constant 0 : index
    %c0_1 = arith.constant 0 : index
    %c0_2 = arith.constant 0 : index
    %3 = vector.load %arg3[%c0, %c0_1, %c0_2] : memref<1x4x256xf32, #tpu.memory_space<vmem>>, vector<1x4x256xf32>
    %4 = vector.shape_cast %3 : vector<1x4x256xf32> to vector<4x256xf32>
    %c0_3 = arith.constant 0 : index
    %c0_4 = arith.constant 0 : index
    %c0_5 = arith.constant 0 : index
    %5 = vector.load %arg4[%c0_3, %c0_4, %c0_5] : memref<1x2x256xf32, #tpu.memory_space<vmem>>, vector<1x1x256xf32>
    %6 = vector.shape_cast %5 : vector<1x1x256xf32> to vector<256xf32>
    %cst = arith.constant dense<0.000000e+00> : vector<256xf32>
    %7 = vector.multi_reduction <add>, %4, %cst [0] : vector<4x256xf32> to vector<256xf32>
    %8 = arith.addf %6, %7 : vector<256xf32>
    %c0_6 = arith.constant 0 : index
    %c0_7 = arith.constant 0 : index
    %c0_8 = arith.constant 0 : index
    %9 = vector.load %arg4[%c0_6, %c0_7, %c0_8] : memref<1x2x256xf32, #tpu.memory_space<vmem>>, vector<1x1x256xf32>
    %10 = vector.shape_cast %9 : vector<1x1x256xf32> to vector<256xf32>
    %11 = vector.shape_cast %8 : vector<256xf32> to vector<1x1x256xf32>
    tpu.vector_store %arg4[%c0_6, %c0_7, %c0_8], %11 {strides = array<i32>} : memref<1x2x256xf32, #tpu.memory_space<vmem>>, vector<1x1x256xf32>,
    %c0_9 = arith.constant 0 : index
    %c1 = arith.constant 1 : index
    %c0_10 = arith.constant 0 : index
    %12 = vector.load %arg4[%c0_9, %c1, %c0_10] : memref<1x2x256xf32, #tpu.memory_space<vmem>>, vector<1x1x256xf32>
    %13 = vector.shape_cast %12 : vector<1x1x256xf32> to vector<256xf32>
    %cst_11 = arith.constant dense<0xFF800000> : vector<256xf32>
    %14 = vector.multi_reduction <maximumf>, %4, %cst_11 [0] : vector<4x256xf32> to vector<256xf32>
    %15 = arith.maximumf %13, %14 : vector<256xf32>
    %c0_12 = arith.constant 0 : index
    %c1_13 = arith.constant 1 : index
    %c0_14 = arith.constant 0 : index
    %16 = vector.load %arg4[%c0_12, %c1_13, %c0_14] : memref<1x2x256xf32, #tpu.memory_space<vmem>>, vector<1x1x256xf32>
    %17 = vector.shape_cast %16 : vector<1x1x256xf32> to vector<256xf32>
    %18 = vector.shape_cast %15 : vector<256xf32> to vector<1x1x256xf32>
    tpu.vector_store %arg4[%c0_12, %c1_13, %c0_14], %18 {strides = array<i32>} : memref<1x2x256xf32, #tpu.memory_space<vmem>>, vector<1x1x256xf32>,
    %c0_i32_15 = arith.constant 0 : i32
    %19 = arith.cmpi eq, %arg2, %c0_i32_15 : i32
    %20 = arith.extui %19 : i1 to i32
    %c0_i32_16 = arith.constant 0 : i32
    %21 = arith.cmpi ne, %20, %c0_i32_16 : i32
    scf.if %21 {
      %c0_17 = arith.constant 0 : index
      %c0_18 = arith.constant 0 : index
      %c0_19 = arith.constant 0 : index
      %22 = vector.load %arg4[%c0_17, %c0_18, %c0_19] : memref<1x2x256xf32, #tpu.memory_space<vmem>>, vector<1x1x256xf32>
      %23 = vector.shape_cast %22 : vector<1x1x256xf32> to vector<256xf32>
      %cst_20 = arith.constant 2.500000e-01 : f32
      %24 = vector.broadcast %cst_20 : f32 to vector<256xf32>
      %25 = arith.mulf %23, %24 : vector<256xf32>
      %c0_21 = arith.constant 0 : index
      %c0_22 = arith.constant 0 : index
      %c0_23 = arith.constant 0 : index
      %26 = vector.load %arg4[%c0_21, %c0_22, %c0_23] : memref<1x2x256xf32, #tpu.memory_space<vmem>>, vector<1x1x256xf32>
      %27 = vector.shape_cast %26 : vector<1x1x256xf32> to vector<256xf32>
      %28 = vector.shape_cast %25 : vector<256xf32> to vector<1x1x256xf32>
      tpu.vector_store %arg4[%c0_21, %c0_22, %c0_23], %28 {strides = array<i32>} : memref<1x2x256xf32, #tpu.memory_space<vmem>>, vector<1x1x256xf32>,
    } else {
    }
    return
  }
  func.func @transform_0(%arg0: i32, %arg1: i32, %arg2: i32) -> (i32, i32, i32) {
    %c0_i32 = arith.constant 0 : i32
    return %arg0, %arg2, %arg1 : i32, i32, i32
  }
  func.func @transform_1(%arg0: i32, %arg1: i32, %arg2: i32) -> (i32, i32, i32) {
    %c0_i32 = arith.constant 0 : i32
    %c0_i32_0 = arith.constant 0 : i32
    return %arg0, %c0_i32, %arg1 : i32, i32, i32
  }
}

</mosaic_0001>

<bundles_post_ra>
// kernel: tpu_custom_call.1
= control target key start
LH: loop header
LB: loop body
LE: loop exit
PB: predicated region body
PF: predicated region fallthrough
CT: control target
= control target key end

     0   :  { %6 = vsyncpa [#allocation3], 0  ;;  %s780_s0 = inlined_call_operand.hbm [shape: f32[2,4,256], index: 0, kind: input, shape index: {}]   ;;  %s781_s1 = inlined_call_operand.hbm [shape: f32[2,2,256], index: 1, kind: output, shape index: {}]  }
   0x1   :  { %8 = vsyncpa [#allocation3 + $0x1], 0 }
   0x2   :  { %9 = vsyncpa [#allocation4], 0 }
   0x3   :  { %11 = vsyncpa [#allocation4 + $0x1], 0  ;;  %s582_s6 = smov 0   ;;  %s584_s7 = smov 0  }
   0x4   :  { %s586_s8 = smov 0   ;;  %s588_s9 = smov 0  }
   0x5   :  { %s590_s10 = smov 0   ;;  %s592_s11 = smov 0  }
   0x6 LB: > { %s367_s12 = sadd.s32 4294967295, %s565_s11   ;;  %s368_s13 = sadd.s32 4294967294, %s565_s11   ;;  %s565_s11 = sphi %s592_s11, %s17_s11   ;;  %s561_s10 = sphi %s590_s10, %s799_s10   ;;  %s557_s9 = sphi %s588_s9, %s798_s9   ;;  %s553_s8 = sphi %s586_s8, %s797_s8   ;;  %s549_s7 = sphi %s584_s7, %s796_s7   ;;  %s545_s6 = sphi %s582_s6, %s795_s6  }
   0x7   : > { %s36_s14 = sadd.s32 1, %s561_s10  ;;  %s47_s15 = sadd.s32 1, %s553_s8 }
   0x8   : > { %p38_p0 = scmp.ge.s32.totalorder %s36_s14, 2  ;;  %p54_p1 = scmp.ne.s32.totalorder %s553_s8, %s549_s7 }
   0x9   : > { %p55_p2 = scmp.eq.s32.totalorder %s565_s11, 0  ;;  %p60_p3 = scmp.ne.s32.totalorder %s549_s7, %s545_s6 }
   0xa   : > { %s801_s14 = smov (%p38_p0, %s36_s14), 0  ;;  %p61_p5 = scmp.eq.s32.totalorder %s367_s12, 0 }
   0xb   : > { %p623_p4 = por %p55_p2, %p54_p1  ;;  %s40_s17 = ssub.s32 %s561_s10, %s801_s14 }
   0xc   : > { %p86_p6 = scmp.eq.s32.totalorder %s367_s12, 1  ;;  %p45_p7 = scmp.eq.s32.totalorder %s40_s17, 0 }
   0xd   : > { %p629_p8 = por %p61_p5, %p60_p3  ;;  %p92_p10 = scmp.eq.s32.totalorder %s368_s13, 1 }
   0xe   : > { %p633_p9 = por %p86_p6, %p54_p1  ;;  %p399_p13 = scmp.lt.s32.totalorder %s565_s11, 2 }
   0xf   : > { %s638_s20 = scalar_select %p45_p7, %s553_s8, %s47_s15  }
  0x10   : > { %s785_s19 = scalar_select %p633_p9, 1, 0 }
  0x11   : > { %p640_p11 = por %p92_p10, %p60_p3  ;;  %s112_s22 = sand.u32 1, %s553_s8  }
  0x12   : > { %s371_s23 = sshll.u32 %s112_s22, 3  ;;  %s385_s24 = sshll.u32 %s561_s10, 7 }
  0x13   : > { %s786_s21 = scalar_select %p640_p11, 1, 0 }
  0x14   : > { %s651_s27 = scalar_lea.hbm %s780_s0, %s385_s24  ;;  %s116_s28 = scalar_lea.vmem [#allocation2], %s371_s23 }
  0x15   : > { %s128_s29 = sshll.u32 %s116_s28, 4  ;;  %p657_p0 = pnand %p399_p13, %p623_p4  ;;  %s653_s29 = int_to_ptr.vmem [resolvable:$true] %s128_s29 }
  0x16   : > { %s113_s2 = scalar_lea.sflag [#allocation3], %s112_s22  ;;  %s453_s3 = scalar_lea.hbm %s651_s27, 128 }
  0x17   : > { %p454_p3 = scmp.ne.s32.totalorder %s651_s27, %s453_s3  ;;  %p455_p5 = pneg %p657_p0 }
  0x18   : > { %s458_s12 = scalar_lea.hbm %s780_s0, 256  ;;  %p459_p4 = scmp.lt.u32.totalorder %s651_s27, %s780_s0 }
  0x19   : > { %p456_p6 = pnand %p455_p5, %p454_p3  ;;  %p460_p10 = scmp.lt.u32.totalorder %s458_s12, %s453_s3 }
  0x1a   : > { %p462_p12 = scmp.lt.u32.totalorder %s453_s3, %s651_s27 }
  0x1b   : > { %p457_p7 = pneg %p456_p6  ;;  %p461_p13 = por %p460_p10, %p459_p4 }
  0x1d   : > { %p463_p1 = por %p462_p12, %p461_p13 }
  0x1f   : > { %p464_p2 = pnand %p463_p1, %p457_p7 }
  0x21   : > { %467 = shalt.err (!%p464_p2)
}
  0x22   : > { %s468_s16 = scalar_lea.vmem %s653_s29, 128  ;;  %s567_s17 = smov [#allocation2]  }
  0x23   : > { %p469_p3 = scmp.ne.s32.totalorder %s653_s29, %s468_s16  ;;  %s473_s22 = sshll.u32 %s567_s17, 4  ;;  %s474_s22 = int_to_ptr.vmem [resolvable:$false] %s473_s22 }
  0x24   : > { %s475_s23 = scalar_lea.vmem %s474_s22, 256  ;;  %p476_p9 = scmp.lt.s32.totalorder %s653_s29, %s474_s22 }
  0x25   : > { %p471_p6 = pnand %p469_p3, %p455_p5  ;;  %p477_p4 = scmp.lt.s32.totalorder %s475_s23, %s468_s16 }
  0x27   : > { %p472_p11 = pneg %p471_p6  ;;  %p478_p10 = por %p477_p4, %p476_p9 }
  0x29   : > { %p479_p12 = pnand %p478_p10, %p472_p11 }
  0x2b   : > { %482 = shalt.err (!%p479_p12)
}
  0x2c   : > { %394 = dma.hbm_to_vmem [thread:$0]  (!%p657_p0), %s651_s27, 128, %s653_s29, %s113_s2  }
  0x2d   : > { %p788_p1 = scmp.lt.s32.totalorder %s565_s11, 3  ;;  %p789_p2 = scmp.ge.s32.totalorder %s565_s11, 1 }
  0x2f   : > { %p134_p5 = pnand %p789_p2, %p788_p1 }
  0x30   : > { %s693_s24 = sand.u32 (!%p134_p5), 1, %s549_s7  }
  0x31   : > { %137 = sbr.rel (%p134_p5) target bundleno = 106 (0x6a), region = 24  ;;  %s375_s25 = sshll.u32 (!%p134_p5), %s693_s24, 3 }
  0x32   : > { %s140_s26 = scalar_lea.sflag (!%p134_p5), [#allocation3], %s693_s24  ;;  %s143_s28 = scalar_lea.vmem (!%p134_p5), [#allocation2], %s375_s25 }
  0x38   : > { %536 = dma.done.wait (%p629_p8), %s140_s26, 128  }
  0x39   : > { %538 = vsyncadd (%p629_p8), %s140_s26, 4294967168  ;;  %s376_s27 = sshll.u32 %s693_s24, 2  ;;  %v168_v0 = vlaneseq  ;;  %v568_v2 = vmov 0.0   ;;  %v569_v3 = vmov -inf   ;;  %vm180_vm1 = vcmask 1043456   ;;  %v175_v4 = vld [vmem:[%s143_s28] sm:$0xff] }
  0x3a   : > { %s706_s29 = scalar_lea.vmem [#allocation5], %s376_s27  ;;  %v178_v5 = vcombine.high %v175_v4, %v175_v4  ;;  %v181_v6 = vsel %vm180_vm1, %v175_v4, 0.0  ;;  %v221_v7 = vsel %vm180_vm1, %v175_v4, -inf  ;;  %v570_v16 = vmov 1966171168   ;;  %s386_s18 = sshll.u32 %s557_s9, 6 }
  0x3b   : > { %vm702_vm0 = vcmp.lt.s32.totalorder %v168_v0, 256  ;;  %v182_v8 = vrot.slane %v181_v6, 4  ;;  %v222_v9 = vrot.slane %v221_v7, 4  ;;  %v199_v17 = vunpack.c.l.s4 %v570_v16  ;;  %s278_s30 = sshll.u32 %s706_s29, 4  ;;  %s728_s4 = scalar_lea.hbm %s781_s1, %s386_s18  ;;  %s730_s30 = int_to_ptr.vmem [resolvable:$true] %s278_s30 }
  0x3c   : > { %172 = vst.msk [vmem:[%s706_s29] ss:$2 sm:$0x3] %vm702_vm0, %v568_v2  ;;  %377 = vst.msk [vmem:[%s706_s29 + $0x1] ss:$2 sm:$0x3] %vm702_vm0, %v569_v3 }
  0x3d   : > { %v188_v10 = vsel %vm180_vm1, %v178_v5, 0.0  ;;  %v228_v11 = vsel %vm180_vm1, %v178_v5, -inf  ;;  %v183_v12 = vadd.f32 %v182_v8, %v181_v6  ;;  %v223_v14 = vmax.f32 %v221_v7, %v222_v9  ;;  %s262_s5 = scalar_lea.sflag [#allocation4], %s693_s24  ;;  %s483_s12 = scalar_lea.vmem %s730_s30, 64 }
  0x3e   : > { %v189_v13 = vrot.slane %v188_v10, 4  ;;  %v229_v15 = vrot.slane %v228_v11, 4  ;;  %v200_v26 = vunpack.c.0.s8 %v199_v17  ;;  %v202_v27 = vshrl.u32 %v168_v0, 7  ;;  %p484_p8 = scmp.ne.s32.totalorder %s730_s30, %s483_s12  ;;  %p792_p9 = scmp.ne.s32.totalorder %s785_s19, 0 }
  0x3f   : > { %v184_v18 = vrot.slane %v183_v12, 2  ;;  %v224_v20 = vrot.slane %v223_v14, 2  ;;  %s571_s9 = smov [#allocation5]  }
  0x40   : > { %v190_v19 = vadd.f32 %v189_v13, %v188_v10  ;;  %v230_v21 = vmax.f32 %v228_v11, %v229_v15  ;;  %v203_v36 = vsub.s32 %v200_v26, %v202_v27  ;;  %p485_p11 = pnand %p484_p8, %p792_p9  ;;  %s487_s13 = sshll.u32 %s571_s9, 4  ;;  %s488_s13 = int_to_ptr.vmem [resolvable:$false] %s487_s13 }
  0x41   : > { %v185_v22 = vadd.f32 %v184_v18, %v183_v12  ;;  %v225_v24 = vmax.f32 %v223_v14, %v224_v20  ;;  %s489_s15 = scalar_lea.vmem %s488_s13, 128  ;;  %p490_p7 = scmp.lt.s32.totalorder %s730_s30, %s488_s13 }
  0x42   : > { %v191_v23 = vrot.slane %v190_v19, 2  ;;  %v231_v25 = vrot.slane %v230_v21, 2  ;;  %p486_p0 = pneg %p485_p11  ;;  %p491_p13 = scmp.lt.s32.totalorder %s489_s15, %s483_s12 }
  0x43   : > { %v186_v28 = vrot.slane %v185_v22, 1  ;;  %v226_v30 = vrot.slane %v225_v24, 1  ;;  %v176_v43 = vld [vmem:[%s706_s29] ss:$2 sm:$0x3] }
  0x44   : > { %v192_v29 = vadd.f32 %v191_v23, %v190_v19  ;;  %v232_v31 = vmax.f32 %v230_v21, %v231_v25  ;;  %v378_v44 = vld [vmem:[%s706_s29 + $0x1] ss:$2 sm:$0x3]  ;;  %p492_p3 = por %p491_p13, %p490_p7 }
  0x45   : > { %v187_v32 = vadd.f32 %v186_v28, %v185_v22  ;;  %v227_v34 = vmax.f32 %v225_v24, %v226_v30 }
  0x46   : > { %v193_v33 = vrot.slane %v192_v29, 1  ;;  %v233_v35 = vrot.slane %v232_v31, 1  ;;  %p493_p6 = pnand %p492_p3, %p486_p0 }
  0x48   : > { %v194_v37 = vadd.f32 %v193_v33, %v192_v29  ;;  %v234_v38 = vmax.f32 %v232_v31, %v233_v35 }
  0x4a   : > { %v197_v39 = vcombine.low %v187_v32, %v194_v37  ;;  %v237_v40 = vcombine.low %v227_v34, %v234_v38 }
  0x4c   : > { %v204_v41 = vrot.slane %v197_v39, %v203_v36  ;;  %v244_v42 = vrot.slane %v237_v40, %v203_v36 }
  0x4e   : > { %v211_v45 = vrot.slane %v204_v41, %v203_v36  ;;  %v251_v46 = vrot.slane %v244_v42, %v203_v36 }
  0x50   : > { %v213_v47 = vadd.f32 %v211_v45, %v176_v43  ;;  %v253_v48 = vmax.f32 %v378_v44, %v251_v46 }
  0x52   : > { %218 = vst.msk [vmem:[%s706_s29] ss:$2 sm:$0x3] %vm702_vm0, %v213_v47  ;;  %379 = vst.msk [vmem:[%s706_s29 + $0x1] ss:$2 sm:$0x3] %vm702_vm0, %v253_v48 }
  0x59   : > { %v258_v49 = vld [vmem:[%s706_s29] ss:$2 sm:$0x3] }
  0x5a   : > { %v259_v50 = vmul.f32 0.25, %v258_v49 }
  0x5c   : > { %260 = vst.msk [vmem:[%s706_s29] ss:$2 sm:$0x3] %vm702_vm0, %v259_v50 }
  0x5d   : > { %496 = shalt.err (!%p493_p6)
}
  0x5e   : > { %s497_s16 = scalar_lea.hbm %s728_s4, 64  ;;  %s501_s23 = scalar_lea.hbm %s781_s1, 128 }
  0x5f   : > { %p498_p4 = scmp.ne.s32.totalorder %s728_s4, %s497_s16  ;;  %p502_p1 = scmp.lt.u32.totalorder %s728_s4, %s781_s1 }
  0x60   : > { %p503_p2 = scmp.lt.u32.totalorder %s501_s23, %s497_s16  ;;  %p505_p8 = scmp.lt.u32.totalorder %s497_s16, %s728_s4 }
  0x61   : > { %p499_p10 = pnand %p498_p4, %p792_p9 }
  0x62   : > { %p504_p5 = por %p503_p2, %p502_p1 }
  0x63   : > { %p500_p12 = pneg %p499_p10 }
  0x64   : > { %p506_p11 = por %p505_p8, %p504_p5 }
  0x66   : > { %p507_p0 = pnand %p506_p11, %p500_p12 }
  0x68   : > { %510 = shalt.err (!%p507_p0)
}
  0x69   : > { %389 = dma.vmem_to_hbm [thread:$0]  (%p792_p9), %s730_s30, 64, %s728_s4, %s262_s5  }
  0x6a PF: > { %s290_s26 = sand.u32 1, %s545_s6   ;;  %p793_p7 = scmp.ne.s32.totalorder %s786_s21, 0 }
  0x6b   : > { %p794_p13 = scmp.ge.s32.totalorder %s565_s11, 2  ;;  %s291_s28 = scalar_lea.sflag [#allocation4], %s290_s26 }
  0x6d   : > { %p396_p3 = pnand %p794_p13, %p793_p7 }
  0x6f   : > { %540 = dma.done.wait (!%p396_p3), %s291_s28, 64  }
  0x70   : > { %542 = vsyncadd (!%p396_p3), %s291_s28, 4294967232  ;;  %s17_s11 = sadd.s32 1, %s565_s11   ;;  %s795_s6 = smov %s549_s7 }
  0x71   : > { %p14_p6 = scmp.ge.s32.totalorder %s17_s11, 4   ;;  %s796_s7 = smov %s553_s8 }
  0x72   : > { %s797_s8 = smov %s638_s20  ;;  %s798_s9 = smov %s561_s10 }
  0x73   : > { %s799_s10 = smov %s801_s14  ;;  %16 = sbr.rel (!%p14_p6) target bundleno = 6 (0x6), region = 79 }
  0x7a   :  { %296 = vsyncpa [#allocation3], 1 }
  0x7b   :  { %298 = vsyncpa [#allocation3 + $0x1], 1 }
  0x7c   :  { %299 = vsyncpa [#allocation4], 1 }
  0x7d   :  { %301 = vsyncpa [#allocation4 + $0x1], 1 }

</bundles_post_ra>
